<compile_context>
chip_gen: v7x
topology: tpu7x:2x2x1
jax: 0.10.0
libtpu: 0.0.40
codegen_flags: <defaults>
</compile_context>

<pallas_src>
import numpy as np
import jax
import jax.numpy as jnp
from jax.experimental import pallas as pl
from jax.experimental.pallas import tpu as pltpu


# Conservative VMEM-residency threshold (safe on v7x's 64 MiB VMEM incl. buffers).
_VMEM_TABLE_LIMIT_BYTES = 24 * 1024 * 1024


def _round_up(n, m):
    return ((n + m - 1) // m) * m


def _vmem_gather_kernel(ids_ref, table_ref, out_ref):
    """Table fully VMEM-resident; gather ROWS rows with dynamic sublane reads."""
    rows = out_ref.shape[0]
    base = pl.program_id(0) * rows

    @pl.loop(0, rows)
    def _(j):
        idx = ids_ref[base + j]
        out_ref[pl.ds(j, 1), :] = table_ref[pl.ds(idx, 1), :]


def _hbm_gather_kernel(ids_ref, table_hbm, out_ref, rows_vmem, sem):
    """Table stays in HBM; issue every per-row DMA of this step, then drain."""
    rows = out_ref.shape[0]
    base = pl.program_id(0) * rows

    # Launch all row fetches (deepest possible "ring": everything in flight).
    @pl.loop(0, rows)
    def _(j):
        idx = ids_ref[base + j]
        pltpu.make_async_copy(
            table_hbm.at[pl.ds(idx, 1), :],
            rows_vmem.at[pl.ds(j, 1), :],
            sem.at[0],
        ).start()

    # Drain: one wait per issued copy (all copies have identical size).
    @pl.loop(0, rows)
    def _(_j):
        pltpu.make_async_copy(
            table_hbm.at[pl.ds(0, 1), :],
            rows_vmem.at[pl.ds(0, 1), :],
            sem.at[0],
        ).wait()

    # Single dense store of the gathered slab into the pipelined output block.
    out_ref[...] = rows_vmem[...]


def features_embedding(x, offsets, table, *, rows_per_step=1024, force_hbm=False):
    """x: (B, F) int, offsets: (F,) int, table: (V, D) -> (B, F, D)."""
    B, F = x.shape
    V, D = table.shape
    itemsize = jnp.dtype(table.dtype).itemsize

    # Offset add folded into the wrapper; only flat global row ids go to SMEM.
    ids = (x.astype(jnp.int32) + offsets.astype(jnp.int32)[None, :]).reshape(B * F)

    n = B * F
    rows = min(_round_up(rows_per_step, 8), _round_up(n, 8))  # rows per grid step
    grid = pl.cdiv(n, rows)
    n_pad = grid * rows
    if n_pad != n:
        # Padded lookups resolve to table row 0; their results land only in the
        # clipped (never written back) part of the edge output block.
        ids = jnp.pad(ids, (0, n_pad - n))

    cost = pl.CostEstimate(flops=0, transcendentals=0,
                           bytes_accessed=2 * n * D * itemsize + n * 4)

    table_bytes = V * D * itemsize
    use_vmem_table = (not force_hbm) and table_bytes <= _VMEM_TABLE_LIMIT_BYTES

    if use_vmem_table:
        vmem_limit = int(min(
            60 * 2**20,
            max(32 * 2**20, 2 * table_bytes + 8 * rows * D * itemsize + (2 << 20)),
        ))
        out_flat = pl.pallas_call(
            _vmem_gather_kernel,
            out_shape=jax.ShapeDtypeStruct((n, D), table.dtype),
            grid_spec=pltpu.PrefetchScalarGridSpec(
                num_scalar_prefetch=1,
                grid=(grid,),
                in_specs=[pl.BlockSpec((V, D), lambda g, ids_ref: (0, 0))],
                out_specs=pl.BlockSpec((rows, D), lambda g, ids_ref: (g, 0)),
            ),
            compiler_params=pltpu.CompilerParams(
                dimension_semantics=("parallel",),
                vmem_limit_bytes=vmem_limit,
            ),
            cost_estimate=cost,
        )(ids, table)
    else:
        out_flat = pl.pallas_call(
            _hbm_gather_kernel,
            out_shape=jax.ShapeDtypeStruct((n, D), table.dtype),
            grid_spec=pltpu.PrefetchScalarGridSpec(
                num_scalar_prefetch=1,
                grid=(grid,),
                in_specs=[pl.BlockSpec(memory_space=pl.ANY)],
                out_specs=pl.BlockSpec((rows, D), lambda g, ids_ref: (g, 0)),
                scratch_shapes=[
                    pltpu.VMEM((rows, D), table.dtype),
                    pltpu.SemaphoreType.DMA((1,)),
                ],
            ),
            compiler_params=pltpu.CompilerParams(
                dimension_semantics=("parallel",),
            ),
            cost_estimate=cost,
        )(ids, table)

    # (B*F, D) -> (B, F, D): pure layout glue in the wrapper.
    return out_flat.reshape(B, F, D)


if __name__ == "__main__":
    # Module config (small, consistent with the PyTorch forward).
    field_dims = [3, 5, 7, 9]
    embed_dim = 32
    num_fields = len(field_dims)
    vocab = int(sum(field_dims))
    offsets = jnp.asarray([0, *np.cumsum(field_dims)[:-1]], dtype=jnp.int32)

    key = jax.random.PRNGKey(0)
    k_w, k_x = jax.random.split(key)

    # Deterministic Xavier-uniform init (matches nn.init.xavier_uniform_).
    bound = float(np.sqrt(6.0 / (vocab + embed_dim)))
    table = jax.random.uniform(k_w, (vocab, embed_dim), dtype=jnp.float32,
                               minval=-bound, maxval=bound)

    def make_x(batch):
        cols = [
            jax.random.randint(jax.random.fold_in(k_x, 100 * batch + f), (batch,),
                               0, field_dims[f], dtype=jnp.int32)
            for f in range(num_fields)
        ]
        return jnp.stack(cols, axis=1)  # (batch, num_fields) int32

    checks = [
        dict(batch=2, rows_per_step=1024, force_hbm=False),  # VMEM-resident table path
        dict(batch=2, rows_per_step=1024, force_hbm=True),   # HBM manual-DMA gather path
        dict(batch=5, rows_per_step=8, force_hbm=False),     # multi-step grid + ragged edge
        dict(batch=5, rows_per_step=8, force_hbm=True),
    ]
    for cfg in checks:
        x = make_x(cfg["batch"])
        out = features_embedding(x, offsets, table,
                                 rows_per_step=cfg["rows_per_step"],
                                 force_hbm=cfg["force_hbm"])
        out = jax.block_until_ready(out)
        ref = jnp.take(table, x + offsets[None, :], axis=0)
        assert out.shape == (cfg["batch"], num_fields, embed_dim)
        np.testing.assert_allclose(np.asarray(out), np.asarray(ref),
                                   rtol=1e-6, atol=1e-6)

    print("KERNEL_OK")
</pallas_src>

<mosaic_0001>
module attributes {stable_mosaic.version = 11 : i64} {
  func.func @_vmem_gather_kernel(%arg0: i32, %arg1: memref<8xi32, #tpu.memory_space<smem>>, %arg2: memref<24x32xf32, #tpu.memory_space<vmem>>, %arg3: memref<8x32xf32, #tpu.memory_space<vmem>>) attributes {dimension_semantics = [#tpu.dimension_semantics<parallel>], iteration_bounds = array<i64: 1>, scalar_prefetch = 1 : i64, scratch_operands = 0 : i64, tpu.core_type = #tpu.core_type<tc>, window_params = [{pipeline_mode = #tpu.pipeline_mode<synchronous>, transform_indices = @transform_0, window_bounds = array<i64: 24, 32>}, {transform_indices = @transform_1, window_bounds = array<i64: 8, 32>}]} {
    %c8_i32 = arith.constant 8 : i32
    %0 = arith.muli %arg0, %c8_i32 : i32
    %c0_i32 = arith.constant 0 : i32
    %c8_i32_0 = arith.constant 8 : i32
    %1 = arith.addi %c0_i32, %c8_i32_0 : i32
    %c1_i32 = arith.constant 1 : i32
    scf.for %arg4 = %c0_i32 to %1 step %c1_i32  : i32 {
      %c1_i32_2 = arith.constant 1 : i32
      %2 = arith.muli %arg4, %c1_i32_2 : i32
      %c0_i32_3 = arith.constant 0 : i32
      %3 = arith.addi %c0_i32_3, %2 : i32
      %4 = arith.addi %0, %3 : i32
      %5 = arith.index_cast %4 : i32 to index
      %6 = memref.load %arg1[%5] : memref<8xi32, #tpu.memory_space<smem>>
      %7 = arith.index_cast %6 : i32 to index
      %c0 = arith.constant 0 : index
      %8 = vector.load %arg2[%7, %c0] : memref<24x32xf32, #tpu.memory_space<vmem>>, vector<1x32xf32>
      %9 = arith.index_cast %3 : i32 to index
      %c0_4 = arith.constant 0 : index
      %10 = vector.load %arg3[%9, %c0_4] : memref<8x32xf32, #tpu.memory_space<vmem>>, vector<1x32xf32>
      tpu.vector_store %arg3[%9, %c0_4], %8 {strides = array<i32>} : memref<8x32xf32, #tpu.memory_space<vmem>>, vector<1x32xf32>,
    }
    %c8_i32_1 = arith.constant 8 : i32
    return
  }
  func.func @transform_0(%arg0: i32, %arg1: memref<8xi32, #tpu.memory_space<smem>>) -> (i32, i32) {
    %c0_i32 = arith.constant 0 : i32
    %c0_i32_0 = arith.constant 0 : i32
    %c0_i32_1 = arith.constant 0 : i32
    return %c0_i32, %c0_i32_0 : i32, i32
  }
  func.func @transform_1(%arg0: i32, %arg1: memref<8xi32, #tpu.memory_space<smem>>) -> (i32, i32) {
    %c0_i32 = arith.constant 0 : i32
    %c0_i32_0 = arith.constant 0 : i32
    return %arg0, %c0_i32 : i32, i32
  }
}

</mosaic_0001>

<bundles_post_ra>
// kernel: tpu_custom_call.1
= control target key start
LH: loop header
LB: loop body
LE: loop exit
PB: predicated region body
PF: predicated region fallthrough
CT: control target
= control target key end

     0   :  { %s201_s0 = inlined_call_operand.hbm [shape: s32[8], index: 0, kind: input, shape index: {}]   ;;  %s202_s1 = inlined_call_operand.hbm [shape: f32[24,32], index: 1, kind: input, shape index: {}]   ;;  %s203_s2 = inlined_call_operand.hbm [shape: f32[8,32], index: 2, kind: output, shape index: {}]  }
   0x1   :  { %s77_s11 = scalar_lea.hbm %s201_s0, 16 }
   0x2   :  { %p78_p0 = scmp.ne.s32.totalorder %s201_s0, %s77_s11  ;;  %p81_p1 = scmp.lt.u32.totalorder %s77_s11, %s201_s0 }
   0x4   :  { %p83_p2 = pnand %p81_p1, %p78_p0 }
   0x6   :  { %86 = shalt.err (!%p83_p2)  }
   0x7   :  { %s145_s16 = smov [#allocation3]  }
   0x8   :  { %8 = dma.hbm_to_smem %s201_s0, 16, %s145_s16, [#allocation2] }
   0x9   :  { %135 = dma.done.wait [#allocation2], 16 }
   0xa   :  { %136 = vsyncadd [#allocation2], 4294967280 }
   0xb   :  { %10 = sfence }
   0xc   :  { %11 = vsyncpa [#allocation5], 0 }
   0xd   :  { %12 = vsyncpa [#allocation6], 0  ;;  %s146_s19 = smov [#allocation4]   ;;  %s87_s23 = scalar_lea.hbm %s202_s1, 384 }
   0xe   :  { %s18_s20 = sshll.u32 %s146_s19, 4  ;;  %p88_p3 = scmp.ne.s32.totalorder %s202_s1, %s87_s23  ;;  %s19_s20 = int_to_ptr.vmem [resolvable:$true] %s18_s20 }
   0xf   :  { %p91_p4 = scmp.lt.u32.totalorder %s87_s23, %s202_s1 }
  0x11   :  { %p93_p5 = pnand %p91_p4, %p88_p3 }
  0x13   :  { %96 = shalt.err (!%p93_p5)
}
  0x14   :  { %s97_s0 = scalar_lea.vmem %s19_s20, 384  ;;  %p102_p7 = scmp.lt.s32.totalorder %s19_s20, %s19_s20 }
  0x15   :  { %p98_p6 = scmp.ne.s32.totalorder %s19_s20, %s97_s0  ;;  %p103_p8 = scmp.lt.s32.totalorder %s97_s0, %s97_s0 }
  0x17   :  { %p104_p9 = por %p103_p8, %p102_p7 }
  0x19   :  { %p105_p10 = pnand %p104_p9, %p98_p6 }
  0x1b   :  { %108 = shalt.err (!%p105_p10)
}
  0x1c   :  { %s147_s28 = smov 128   ;;  %s148_s29 = smov 8  }
  0x1d   :  { %24 = dma.hbm_to_vmem [thread:$0]  %s202_s1, 384, %s19_s20, [#allocation5], %s147_s28, %s147_s28, %s148_s29  }
  0x1e   :  { %137 = dma.done.wait [#allocation5], 384  }
  0x1f   :  { %138 = vsyncadd [#allocation5], 4294966912  ;;  %s141_s4 = smov 0  }
  0x20 LB: > { %s36_s5 = sld [smem:[#allocation3 + %s143_s4]]  ;;  %vm40_vm0 = vcmask 253952   ;;  %s39_s7 = scalar_lea.vmem [#allocation7], %s143_s4  ;;  %s143_s4 = sphi %s141_s4, %s34_s4  }
  0x21   : > { %s34_s4 = sadd.s32 1, %s143_s4  }
  0x22   : > { %p31_p11 = scmp.ge.s32.totalorder %s34_s4, 8  }
  0x23   :  { %s149_s8 = smov (%p31_p11), [#allocation7]  }
  0x24   :  { %33 = sbr.rel (!%p31_p11) target bundleno = 32 (0x20), region = 37  ;;  %s48_s9 = sshll.u32 (%p31_p11), %s149_s8, 4  ;;  %s49_s9 = int_to_ptr.vmem [resolvable:$true] %s48_s9 }
  0x25   :  { %s109_s1 = scalar_lea.vmem (%p31_p11), %s49_s9, 128  ;;  %p114_p13 = scmp.lt.s32.totalorder (%p31_p11), %s49_s9, %s49_s9 }
  0x26   : > { %s37_s6 = scalar_lea.vmem [#allocation4], %s36_s5  ;;  %p110_p12 = scmp.ne.s32.totalorder (%p31_p11), %s49_s9, %s109_s1 }
  0x27   : > { %v38_v0 = vld [vmem:[%s37_s6] sm:$0x1]  ;;  %p115_p0 = scmp.lt.s32.totalorder (%p31_p11), %s109_s1, %s109_s1 }
  0x28   : > { %41 = vst.msk [vmem:[%s39_s7] sm:$0x1] %vm40_vm0, %v38_v0 }
  0x29   :  { %p116_p1 = por (%p31_p11), %p115_p0, %p114_p13 }
  0x2b   :  { %p117_p2 = pnand %p116_p1, %p110_p12 }
  0x2d   :  { %120 = shalt.err (!%p117_p2)
}
  0x2e   :  { %s121_s12 = scalar_lea.hbm %s203_s2, 128 }
  0x2f   :  { %p122_p3 = scmp.ne.s32.totalorder %s203_s2, %s121_s12  ;;  %p125_p4 = scmp.lt.u32.totalorder %s121_s12, %s203_s2 }
  0x31   :  { %p127_p5 = pnand %p125_p4, %p122_p3 }
  0x33   :  { %130 = shalt.err (!%p127_p5)
}
  0x34   :  { %51 = dma.vmem_to_hbm [thread:$0]  %s49_s9, 128, %s203_s2, [#allocation6]  }
  0x35   :  { %139 = dma.done.wait [#allocation6], 128  }
  0x36   :  { %140 = vsyncadd [#allocation6], 4294967168 }
  0x37   :  { %55 = vsyncpa [#allocation5], 1 }
  0x38   :  { %56 = vsyncpa [#allocation6], 1 }

</bundles_post_ra>
